<compile_context>
chip_gen: v5e
topology: v5e:2x2
jax: 0.10.0
libtpu: 0.0.40
codegen_flags: <defaults>
</compile_context>

<pallas_src>
import functools

import jax
import jax.numpy as jnp
from jax.experimental import pallas as pl
from jax.experimental.pallas import tpu as pltpu

HIDDEN = 30


def _round_up(x, m):
    return ((x + m - 1) // m) * m


def _choose_tb(b128, block_batch, min_grid_steps):
    """Pick the batch tile: biggest lane-aligned tile up to block_batch.

    min_grid_steps > 1 (e.g. 2 on v7x) forces >=2 grid steps so the 'parallel'
    batch axis can shard across both TensorCores."""
    tb = min(_round_up(block_batch, 128), b128)
    if min_grid_steps > 1:
        tb = min(tb, _round_up(-(-b128 // min_grid_steps), 128))
    return max(tb, 128)


def _mlp_kernel(xt_ref, w1_ref, b1_ref, w2_ref, b2_ref, o_ref):
    # Feature-major (lane-dense) layout: batch sits on the 128-lane axis.
    xt = xt_ref[...]                                                   # (Dp, TB)
    h = jnp.dot(w1_ref[...], xt, preferred_element_type=jnp.float32)  # (Hp, TB) f32
    h = jnp.maximum(h + b1_ref[...], 0.0)                             # bias+ReLU in f32
    q = jnp.dot(w2_ref[...], h.astype(w2_ref.dtype),                  # bf16/f32 operands,
                preferred_element_type=jnp.float32)                   # f32 accumulate
    o_ref[...] = (q + b2_ref[...]).astype(o_ref.dtype)


def _forward_padded(xt, w1p, b1p, w2p, b2p, tb):
    d_pad, b_pad = xt.shape
    h_pad = w1p.shape[0]
    a_pad = w2p.shape[0]
    grid = (b_pad // tb,)

    x_bytes = xt.dtype.itemsize
    w_bytes = w1p.dtype.itemsize
    cost = pl.CostEstimate(
        flops=2 * b_pad * (d_pad * h_pad + h_pad * a_pad),
        transcendentals=0,
        bytes_accessed=(d_pad * b_pad * x_bytes          # activations in
                        + a_pad * b_pad * 4              # q out (f32)
                        + (h_pad * d_pad + a_pad * h_pad) * w_bytes
                        + (h_pad + a_pad) * 4),
    )

    resident = lambda arr: pl.BlockSpec(arr.shape, lambda i: (0, 0))

    return pl.pallas_call(
        _mlp_kernel,
        out_shape=jax.ShapeDtypeStruct((a_pad, b_pad), jnp.float32),
        grid=grid,
        in_specs=[
            pl.BlockSpec((d_pad, tb), lambda i: (0, i)),  # x tile, pipelined
            resident(w1p),                                # weights VMEM-resident
            resident(b1p),
            resident(w2p),
            resident(b2p),
        ],
        out_specs=pl.BlockSpec((a_pad, tb), lambda i: (0, i)),
        compiler_params=pltpu.CompilerParams(
            dimension_semantics=("parallel",)),
        cost_estimate=cost,
    )(xt, w1p, b1p, w2p, b2p)


def prepare_params(w1, b1, w2, b2, *, compute_dtype=jnp.float32):
    """One-time padding of the PyTorch-layout params (out_features, in_features).

    hidden -> 32, nb_action -> 8, input_size -> multiple of 8; padding is zeros
    so the math is exactly unchanged.  `compute_dtype=jnp.bfloat16` halves the
    weight/activation DMA traffic on v6e/v7x (accumulation stays f32)."""
    hidden, input_size = w1.shape
    nb_action = w2.shape[0]
    d_pad = _round_up(input_size, 8)
    h_pad = _round_up(hidden, 8)
    a_pad = _round_up(nb_action, 8)
    w1p = jnp.pad(jnp.asarray(w1, jnp.float32),
                  ((0, h_pad - hidden), (0, d_pad - input_size))).astype(compute_dtype)
    b1p = jnp.pad(jnp.asarray(b1, jnp.float32).reshape(hidden, 1),
                  ((0, h_pad - hidden), (0, 0)))                        # bias stays f32
    w2p = jnp.pad(jnp.asarray(w2, jnp.float32),
                  ((0, a_pad - nb_action), (0, h_pad - hidden))).astype(compute_dtype)
    b2p = jnp.pad(jnp.asarray(b2, jnp.float32).reshape(nb_action, 1),
                  ((0, a_pad - nb_action), (0, 0)))                     # bias stays f32
    return w1p, b1p, w2p, b2p


def prepare_state_fm(state, *, compute_dtype=jnp.float32):
    """Optional one-time relayout of a batch of states to feature-major (Dp, Bp)."""
    batch, input_size = state.shape
    d_pad = _round_up(input_size, 8)
    b_pad = _round_up(batch, 128)
    return jnp.pad(state.astype(compute_dtype),
                   ((0, b_pad - batch), (0, d_pad - input_size))).T


@functools.partial(jax.jit,
                   static_argnames=("nb_action", "block_batch", "min_grid_steps"))
def network_forward(state, w1p, b1p, w2p, b2p, *, nb_action,
                    block_batch=16384, min_grid_steps=1):
    """PyTorch-convention forward: state (B, input_size) -> q_values (B, nb_action).

    Params must come from `prepare_params`.  Set min_grid_steps=2 on v7x to
    feed both TensorCores at large batch."""
    batch, input_size = state.shape
    d_pad = w1p.shape[1]
    b128 = _round_up(batch, 128)
    tb = _choose_tb(b128, block_batch, min_grid_steps)
    b_pad = _round_up(b128, tb)
    # Single pad (batch + feature dims together) + transpose to lane-dense layout.
    xt = jnp.pad(state.astype(w1p.dtype),
                 ((0, b_pad - batch), (0, d_pad - input_size))).T
    qt = _forward_padded(xt, w1p, b1p, w2p, b2p, tb)
    return qt[:nb_action, :batch].T


@functools.partial(jax.jit, static_argnames=("block_batch", "min_grid_steps"))
def network_forward_fm(state_t, w1p, b1p, w2p, b2p, *,
                       block_batch=16384, min_grid_steps=1):
    """Feature-major hot path: state_t is (Dp, B) with B a multiple of 128
    (see prepare_state_fm); returns q feature-major (Ap, B_pad) with no wrapper
    transpose / slice materialized."""
    d_pad, b_in = state_t.shape
    assert d_pad == w1p.shape[1]
    b128 = _round_up(b_in, 128)
    tb = _choose_tb(b128, block_batch, min_grid_steps)
    b_pad = _round_up(b128, tb)
    xt = state_t.astype(w1p.dtype)
    if b_pad != b_in:
        xt = jnp.pad(xt, ((0, 0), (0, b_pad - b_in)))
    return _forward_padded(xt, w1p, b1p, w2p, b2p, tb)


def init_params(key, input_size, nb_action, hidden=HIDDEN):
    """PyTorch nn.Linear default init: uniform(-1/sqrt(fan_in), 1/sqrt(fan_in)).

    Weights returned in PyTorch layout (out_features, in_features)."""
    k1, k2, k3, k4 = jax.random.split(key, 4)
    lim1 = 1.0 / jnp.sqrt(jnp.float32(input_size))
    lim2 = 1.0 / jnp.sqrt(jnp.float32(hidden))
    w1 = jax.random.uniform(k1, (hidden, input_size), jnp.float32, -lim1, lim1)
    b1 = jax.random.uniform(k2, (hidden,), jnp.float32, -lim1, lim1)
    w2 = jax.random.uniform(k3, (nb_action, hidden), jnp.float32, -lim2, lim2)
    b2 = jax.random.uniform(k4, (nb_action,), jnp.float32, -lim2, lim2)
    return w1, b1, w2, b2


if __name__ == "__main__":
    # Self-driving-car setup: input_size = 5 signals, nb_action = 3 actions.
    input_size, nb_action, batch = 5, 3, 2

    key = jax.random.PRNGKey(0)
    k_params, k_state, k_state2 = jax.random.split(key, 3)
    w1, b1, w2, b2 = init_params(k_params, input_size, nb_action)
    state = jax.random.normal(k_state, (batch, input_size), jnp.float32)

    # Plain-JAX reference of the same forward pass.
    ref = jnp.maximum(state @ w1.T + b1, 0.0) @ w2.T + b2

    # 1) f32 path (exact match with the PyTorch forward).
    params_f32 = prepare_params(w1, b1, w2, b2)
    q_values = network_forward(state, *params_f32, nb_action=nb_action)
    jax.block_until_ready(q_values)
    assert q_values.shape == (batch, nb_action)
    assert jnp.allclose(q_values, ref, atol=1e-5, rtol=1e-5)

    # 2) bf16-operand path (v6e/v7x HBM-traffic halving; f32 accumulate).
    params_bf16 = prepare_params(w1, b1, w2, b2, compute_dtype=jnp.bfloat16)
    q_bf16 = network_forward(state, *params_bf16, nb_action=nb_action)
    jax.block_until_ready(q_bf16)
    assert jnp.allclose(q_bf16, ref, atol=5e-2, rtol=5e-2)

    # 3) Feature-major hot path (no per-call transpose / output slice+transpose),
    #    larger replay-buffer-style batch.
    batch2 = 300
    state2 = jax.random.normal(k_state2, (batch2, input_size), jnp.float32)
    ref2 = jnp.maximum(state2 @ w1.T + b1, 0.0) @ w2.T + b2
    state2_t = prepare_state_fm(state2)
    qt2 = network_forward_fm(state2_t, *params_f32)
    jax.block_until_ready(qt2)
    assert jnp.allclose(qt2[:nb_action, :batch2].T, ref2, atol=1e-5, rtol=1e-5)

    print("KERNEL_OK")
</pallas_src>

<mosaic_0001>
module attributes {stable_mosaic.version = 11 : i64} {
  func.func @_mlp_kernel(%arg0: i32, %arg1: memref<8x128xf32, #tpu.memory_space<vmem>>, %arg2: memref<32x8xf32, #tpu.memory_space<vmem>>, %arg3: memref<32x1xf32, #tpu.memory_space<vmem>>, %arg4: memref<8x32xf32, #tpu.memory_space<vmem>>, %arg5: memref<8x1xf32, #tpu.memory_space<vmem>>, %arg6: memref<8x128xf32, #tpu.memory_space<vmem>>) attributes {dimension_semantics = [#tpu.dimension_semantics<parallel>], iteration_bounds = array<i64: 1>, scalar_prefetch = 0 : i64, scratch_operands = 0 : i64, tpu.core_type = #tpu.core_type<tc>, window_params = [{transform_indices = @transform_0, window_bounds = array<i64: 8, 128>}, {pipeline_mode = #tpu.pipeline_mode<synchronous>, transform_indices = @transform_1, window_bounds = array<i64: 32, 8>}, {pipeline_mode = #tpu.pipeline_mode<synchronous>, transform_indices = @transform_2, window_bounds = array<i64: 32, 1>}, {pipeline_mode = #tpu.pipeline_mode<synchronous>, transform_indices = @transform_3, window_bounds = array<i64: 8, 32>}, {pipeline_mode = #tpu.pipeline_mode<synchronous>, transform_indices = @transform_4, window_bounds = array<i64: 8, 1>}, {transform_indices = @transform_5, window_bounds = array<i64: 8, 128>}]} {
    %c0 = arith.constant 0 : index
    %c0_0 = arith.constant 0 : index
    %0 = vector.load %arg1[%c0, %c0_0] : memref<8x128xf32, #tpu.memory_space<vmem>>, vector<8x128xf32>
    %c0_1 = arith.constant 0 : index
    %c0_2 = arith.constant 0 : index
    %1 = vector.load %arg2[%c0_1, %c0_2] : memref<32x8xf32, #tpu.memory_space<vmem>>, vector<32x8xf32>
    %cst = arith.constant dense<0.000000e+00> : vector<32x128xf32>
    %2 = tpu.matmul %1, %0, %cst {dimension_numbers = #tpu.dot_dimension_numbers<[1], [0], [0], [1], [0, 0, 1, 1], [], []>} : vector<32x8xf32>, vector<8x128xf32>, vector<32x128xf32> -> vector<32x128xf32>
    %c0_3 = arith.constant 0 : index
    %c0_4 = arith.constant 0 : index
    %3 = vector.load %arg3[%c0_3, %c0_4] : memref<32x1xf32, #tpu.memory_space<vmem>>, vector<32x1xf32>
    %4 = vector.broadcast %3 : vector<32x1xf32> to vector<32x128xf32>
    %5 = arith.addf %2, %4 : vector<32x128xf32>
    %cst_5 = arith.constant 0.000000e+00 : f32
    %6 = vector.broadcast %cst_5 : f32 to vector<32x128xf32>
    %7 = arith.maximumf %5, %6 : vector<32x128xf32>
    %c0_6 = arith.constant 0 : index
    %c0_7 = arith.constant 0 : index
    %8 = vector.load %arg4[%c0_6, %c0_7] : memref<8x32xf32, #tpu.memory_space<vmem>>, vector<8x32xf32>
    %cst_8 = arith.constant dense<0.000000e+00> : vector<8x128xf32>
    %9 = tpu.matmul %8, %7, %cst_8 {dimension_numbers = #tpu.dot_dimension_numbers<[1], [0], [0], [1], [0, 0, 1, 1], [], []>} : vector<8x32xf32>, vector<32x128xf32>, vector<8x128xf32> -> vector<8x128xf32>
    %c0_9 = arith.constant 0 : index
    %c0_10 = arith.constant 0 : index
    %10 = vector.load %arg5[%c0_9, %c0_10] : memref<8x1xf32, #tpu.memory_space<vmem>>, vector<8x1xf32>
    %11 = vector.broadcast %10 : vector<8x1xf32> to vector<8x128xf32>
    %12 = arith.addf %9, %11 : vector<8x128xf32>
    %c0_11 = arith.constant 0 : index
    %c0_12 = arith.constant 0 : index
    %13 = vector.load %arg6[%c0_11, %c0_12] : memref<8x128xf32, #tpu.memory_space<vmem>>, vector<8x128xf32>
    tpu.vector_store %arg6[%c0_11, %c0_12], %12 {strides = array<i32>} : memref<8x128xf32, #tpu.memory_space<vmem>>, vector<8x128xf32>,
    return
  }
  func.func @transform_0(%arg0: i32) -> (i32, i32) {
    %c0_i32 = arith.constant 0 : i32
    %c0_i32_0 = arith.constant 0 : i32
    return %c0_i32, %arg0 : i32, i32
  }
  func.func @transform_1(%arg0: i32) -> (i32, i32) {
    %c0_i32 = arith.constant 0 : i32
    %c0_i32_0 = arith.constant 0 : i32
    %c0_i32_1 = arith.constant 0 : i32
    return %c0_i32, %c0_i32_0 : i32, i32
  }
  func.func @transform_2(%arg0: i32) -> (i32, i32) {
    %c0_i32 = arith.constant 0 : i32
    %c0_i32_0 = arith.constant 0 : i32
    %c0_i32_1 = arith.constant 0 : i32
    return %c0_i32, %c0_i32_0 : i32, i32
  }
  func.func @transform_3(%arg0: i32) -> (i32, i32) {
    %c0_i32 = arith.constant 0 : i32
    %c0_i32_0 = arith.constant 0 : i32
    %c0_i32_1 = arith.constant 0 : i32
    return %c0_i32, %c0_i32_0 : i32, i32
  }
  func.func @transform_4(%arg0: i32) -> (i32, i32) {
    %c0_i32 = arith.constant 0 : i32
    %c0_i32_0 = arith.constant 0 : i32
    %c0_i32_1 = arith.constant 0 : i32
    return %c0_i32, %c0_i32_0 : i32, i32
  }
  func.func @transform_5(%arg0: i32) -> (i32, i32) {
    %c0_i32 = arith.constant 0 : i32
    %c0_i32_0 = arith.constant 0 : i32
    return %c0_i32, %arg0 : i32, i32
  }
}

</mosaic_0001>

<bundles_post_ra>
// kernel: network_forward.1
= control target key start
LH: loop header
LB: loop body
LE: loop exit
PB: predicated region body
PF: predicated region fallthrough
CT: control target
= control target key end

     0   :  { %vm49_vm0 = vcmask 64512   ;;  %v142_v3 = vmov 0   ;;  %vm102_vm1 = vcmask 261120   ;;  %s213_s0 = inlined_call_operand.vmem [shape: f32[8,128], index: 0, kind: input, shape index: {}]   ;;  %s214_s1 = inlined_call_operand.vmem [shape: f32[32,8], index: 1, kind: input, shape index: {}]   ;;  %s215_s2 = inlined_call_operand.vmem [shape: f32[32,1], index: 2, kind: input, shape index: {}]   ;;  %s216_s4 = inlined_call_operand.vmem [shape: f32[8,1], index: 4, kind: input, shape index: {}]   ;;  %s217_s3 = inlined_call_operand.vmem [shape: f32[8,32], index: 3, kind: input, shape index: {}]   ;;  %s218_s5 = inlined_call_operand.vmem [shape: f32[8,128], index: 5, kind: output, shape index: {}]  }
   0x1   :  { %v20_v0 = vld [vmem:[%s213_s0] sm:$0xff]  ;;  %v22_v1 = vld [vmem:[%s214_s1 + $0x8] sm:$0xff]  ;;  %v24_v2 = vld [vmem:[%s214_s1 + $0x18] sm:$0xff]  ;;  %139 = vset.pattern.permute.xlu0 %v142_v3  ;;  %140 = vset.pattern.permute.xlu1 %v142_v3 }
   0x2   :  { %136 = vmatpush.msra.mxu2 %v20_v0  ;;  %137 = vmatpush.msra.mxu3 %v20_v0  ;;  %v28_v4 = vld [vmem:[%s215_s2 + $0x18] sm:$0xff]  ;;  %v21_v5 = vld [vmem:[%s214_s1] sm:$0xff]  ;;  %v26_v6 = vld [vmem:[%s215_s2 + $0x8] sm:$0xff] }
   0x3   :  { %132 = vmatmul.msk.f32.vlgmr.msra.gmra.mxu2 %vm49_vm0, %v22_v1  ;;  %134 = vmatmul.msk.f32.vlgmr.msra.gmra.mxu3 %vm49_vm0, %v24_v2  ;;  %v23_v7 = vld [vmem:[%s214_s1 + $0x10] sm:$0xff]  ;;  %v25_v9 = vld [vmem:[%s215_s2] sm:$0xff] }
   0x4   :  { %46 = vperm.xlu0 %139, %v28_v4   ;;  %77 = vmatpush.msra.mxu0 %v20_v0  ;;  %v27_v8 = vld [vmem:[%s215_s2 + $0x10] sm:$0xff]  ;;  %v96_v10 = vld [vmem:[%s216_s4] sm:$0xff] }
   0x5   :  { %131 = vmatmul.msk.f32.vlgmr.msra.gmra.mxu0 %vm49_vm0, %v21_v5  ;;  %36 = vperm.xlu1 %140, %v26_v6   ;;  %v95_v27 = vld [vmem:[%s217_s3] sm:$0xff] }
   0x6   :  { %141 = vset.pattern.permute.xlu2 %v142_v3 }
   0x7   :  { %99 = vperm.xlu2 %141, %v96_v10  }
   0xb   :  { %133 = vmatmul.msk.f32.gmra.mxu2 %vm49_vm0, %v23_v7 }
   0xc   :  { %41 = vperm.xlu0 %139, %v27_v8  }
   0xd   :  { %31 = vperm.xlu1 %140, %v25_v9  }
  0x61   :  { %v100_v28 = vpop.permute.xlu2 %99 }
  0x76   :  { %v47_v11 = vpop.permute.xlu0 %46 }
  0x77   :  { %v37_v12 = vpop.permute.xlu1 %36 }
  0x7e   :  { %v42_v17 = vpop.permute.xlu0 %41 }
  0x7f   :  { %v32_v18 = vpop.permute.xlu1 %31 }
  0x82   :  { %v79_v19 = vpop.f32.mrf.mxu0 }
  0x83   :  { %v80_v23 = vadd.f32 %v79_v19, %v32_v18 }
  0x85   :  { %v91_v26 = vmax.f32 %v80_v23, 0.0 }
  0x86   :  { %v82_v13 = vpop.f32.mrf.mxu2  ;;  %v88_v14 = vpop.f32.mrf.mxu3 }
  0x87   :  { %v89_v15 = vadd.f32 %v88_v14, %v47_v11  ;;  %v83_v21 = vadd.f32 %v82_v13, %v37_v12 }
  0x89   :  { %v94_v16 = vmax.f32 %v89_v15, 0.0  ;;  %v92_v25 = vmax.f32 %v83_v21, 0.0 }
  0x8b   :  { %118 = vmatpush.msra.mxu1 %v94_v16 }
  0x8e   :  { %v85_v20 = vpop.f32.mrf.mxu2 }
  0x8f   :  { %v86_v22 = vadd.f32 %v85_v20, %v42_v17 }
  0x91   :  { %v93_v24 = vmax.f32 %v86_v22, 0.0 }
  0x93   :  { %119 = vmatpush.msra.mxu1 %v93_v24 }
  0x95   :  { %120 = vmatpush.msra.mxu1 %v92_v25 }
  0x97   :  { %121 = vmatpush.msra.mxu1 %v91_v26 }
  0x98   :  { %135 = vmatmul.msk.f32.vlgmr.msra.gmra.mxu1 %vm102_vm1, %v95_v27 }
 0x115   :  { %v123_v29 = vpop.f32.mrf.mxu1 }
 0x116   :  { %v124_v30 = vadd.f32 %v123_v29, %v100_v28 }
 0x118   :  { %126 = vst [vmem:[%s218_s5] sm:$0xff] %v124_v30 }

</bundles_post_ra>
